<compile_context>
chip_gen: v7x
topology: tpu7x:2x2x1
jax: 0.10.0
libtpu: 0.0.40
codegen_flags: <defaults>
</compile_context>

<pallas_src>
import jax
import jax.numpy as jnp
from jax.experimental import pallas as pl
from jax.experimental.pallas import tpu as pltpu

NUM_INPUT = 2
NUM_OUTPUT = 2

# Lane-tile candidates for the batch axis (batch lives on lanes after repacking).
_TILE_CANDIDATES = (2048, 1024, 512, 256, 128)


def _pick_tile(batch: int) -> int:
    for t in _TILE_CANDIDATES:
        if batch % t == 0:
            return t
    return batch  # small / odd batch: whole array as one block


def multi_io_kernel(a_ref, c_ref, x_ref, o_ref):
    """Fused forward pass as pure VPU FMAs.

    a_ref : (NUM_INPUT, NUM_OUTPUT) in SMEM -- folded weights A[i, j] = w_in[i] * w_out[j, i]
    c_ref : (NUM_OUTPUT,)           in SMEM -- folded biases  c[j] = sum_i b_in[i]*w_out[j,i] + b_out[j]
    x_ref : (NUM_INPUT, TILE_B)     in VMEM -- inputs, batch on the lane axis
    o_ref : (NUM_OUTPUT, TILE_B)    in VMEM -- outputs, batch on the lane axis
    """
    x0 = x_ref[0:1, :]  # (1, TILE_B)
    x1 = x_ref[1:2, :]  # (1, TILE_B)
    # o_j = x0 * A[0, j] + x1 * A[1, j] + c[j]   (scalar broadcasts from SMEM)
    o_ref[0:1, :] = x0 * a_ref[0, 0] + x1 * a_ref[1, 0] + c_ref[0]
    o_ref[1:2, :] = x0 * a_ref[0, 1] + x1 * a_ref[1, 1] + c_ref[1]


def multi_io_forward(x0, x1, w_in, b_in, w_out, b_out):
    """Wrapper around pallas_call.

    x0, x1 : (B, 1)                  model inputs
    w_in   : (num_input,)            per-input Linear(1,1) weights (scalar each)
    b_in   : (num_input,)            per-input Linear(1,1) biases
    w_out  : (num_output, num_input) stacked output Linear weights (torch layout: (out_f, in_f))
    b_out  : (num_output,)           stacked output Linear biases
    """
    B = x0.shape[0]

    # Lane-dense packing: (num_input, B), batch on lanes.
    xs = jnp.stack([x0.reshape(B), x1.reshape(B)], axis=0).astype(jnp.float32)

    # Fold the whole affine chain into 6 scalars (wrapper cost ~8 flops).
    w_in_f = w_in.astype(jnp.float32)
    b_in_f = b_in.astype(jnp.float32)
    w_out_f = w_out.astype(jnp.float32)
    b_out_f = b_out.astype(jnp.float32)
    A = w_in_f[:, None] * w_out_f.T          # (num_input, num_output)
    c = w_out_f @ b_in_f + b_out_f           # (num_output,)

    tile_b = _pick_tile(B)
    grid = (B // tile_b,)

    smem = pl.BlockSpec(memory_space=pltpu.MemorySpace.SMEM)
    out = pl.pallas_call(
        multi_io_kernel,
        out_shape=jax.ShapeDtypeStruct((NUM_OUTPUT, B), jnp.float32),
        grid=grid,
        in_specs=[
            smem,                                                   # A (SMEM scalars)
            smem,                                                   # c (SMEM scalars)
            pl.BlockSpec((NUM_INPUT, tile_b), lambda i: (0, i)),    # packed inputs
        ],
        out_specs=pl.BlockSpec((NUM_OUTPUT, tile_b), lambda i: (0, i)),
        compiler_params=pltpu.CompilerParams(
            dimension_semantics=("parallel",)),                     # shard batch across TCs (v7x)
        cost_estimate=pl.CostEstimate(
            flops=8 * B, transcendentals=0,
            bytes_accessed=4 * B * (NUM_INPUT + NUM_OUTPUT)),
    )(A, c, xs)

    # Split back to the module's two (B, 1) outputs.
    o0 = out[0].reshape(B, 1)
    o1 = out[1].reshape(B, 1)
    return o0, o1


def reference_forward(x0, x1, w_in, b_in, w_out, b_out):
    """Plain-JAX reference mirroring the PyTorch module exactly (unfolded)."""
    y0 = x0 * w_in[0] + b_in[0]
    y1 = x1 * w_in[1] + b_in[1]
    cat = jnp.concatenate([y0, y1], axis=1)            # (B, 2)
    o0 = cat @ w_out[0:1, :].T + b_out[0]
    o1 = cat @ w_out[1:2, :].T + b_out[1]
    return o0, o1


def _run_case(B, key):
    k_x0, k_x1, k_wi, k_bi, k_wo, k_bo = jax.random.split(key, 6)
    x0 = jax.random.normal(k_x0, (B, 1), dtype=jnp.float32)
    x1 = jax.random.normal(k_x1, (B, 1), dtype=jnp.float32)

    # Deterministic parameter init (matches torch Linear default init ranges).
    w_in = jax.random.uniform(k_wi, (NUM_INPUT,), minval=-1.0, maxval=1.0)   # fan_in = 1
    b_in = jax.random.uniform(k_bi, (NUM_INPUT,), minval=-1.0, maxval=1.0)
    bound = 1.0 / jnp.sqrt(float(NUM_INPUT))
    w_out = jax.random.uniform(k_wo, (NUM_OUTPUT, NUM_INPUT), minval=-bound, maxval=bound)
    b_out = jax.random.uniform(k_bo, (NUM_OUTPUT,), minval=-bound, maxval=bound)

    o0, o1 = multi_io_forward(x0, x1, w_in, b_in, w_out, b_out)
    o0 = jax.block_until_ready(o0)
    o1 = jax.block_until_ready(o1)

    r0, r1 = reference_forward(x0, x1, w_in, b_in, w_out, b_out)
    assert o0.shape == (B, 1) and o1.shape == (B, 1)
    assert jnp.allclose(o0, r0, atol=1e-5, rtol=1e-5)
    assert jnp.allclose(o1, r1, atol=1e-5, rtol=1e-5)


if __name__ == "__main__":
    key = jax.random.PRNGKey(0)
    k_small, k_tiled = jax.random.split(key, 2)

    # Small shape consistent with the module (2 inputs of shape (B, 1)).
    _run_case(8, k_small)
    # Slightly larger batch to exercise the lane-tiled (grid > 1) pipelined path.
    _run_case(4096, k_tiled)

    print("KERNEL_OK")
</pallas_src>

<mosaic_0001>
module attributes {stable_mosaic.version = 11 : i64} {
  func.func @multi_io_kernel(%arg0: i32, %arg1: memref<2x2xf32, #tpu.memory_space<smem>>, %arg2: memref<2xf32, #tpu.memory_space<smem>>, %arg3: memref<2x8xf32, #tpu.memory_space<vmem>>, %arg4: memref<2x8xf32, #tpu.memory_space<vmem>>) attributes {dimension_semantics = [#tpu.dimension_semantics<parallel>], iteration_bounds = array<i64: 1>, scalar_prefetch = 0 : i64, scratch_operands = 0 : i64, tpu.core_type = #tpu.core_type<tc>, window_params = [{transform_indices = @transform_0, window_bounds = array<i64: 2, 2>}, {transform_indices = @transform_1, window_bounds = array<i64: 2>}, {transform_indices = @transform_2, window_bounds = array<i64: 2, 8>}, {transform_indices = @transform_3, window_bounds = array<i64: 2, 8>}]} {
    %c0 = arith.constant 0 : index
    %c0_0 = arith.constant 0 : index
    %0 = vector.load %arg3[%c0, %c0_0] : memref<2x8xf32, #tpu.memory_space<vmem>>, vector<1x8xf32>
    %c1 = arith.constant 1 : index
    %c0_1 = arith.constant 0 : index
    %1 = vector.load %arg3[%c1, %c0_1] : memref<2x8xf32, #tpu.memory_space<vmem>>, vector<1x8xf32>
    %c0_2 = arith.constant 0 : index
    %c0_3 = arith.constant 0 : index
    %2 = memref.load %arg1[%c0_2, %c0_3] : memref<2x2xf32, #tpu.memory_space<smem>>
    %3 = vector.broadcast %2 : f32 to vector<1x8xf32>
    %4 = arith.mulf %0, %3 : vector<1x8xf32>
    %c1_4 = arith.constant 1 : index
    %c0_5 = arith.constant 0 : index
    %5 = memref.load %arg1[%c1_4, %c0_5] : memref<2x2xf32, #tpu.memory_space<smem>>
    %6 = vector.broadcast %5 : f32 to vector<1x8xf32>
    %7 = arith.mulf %1, %6 : vector<1x8xf32>
    %8 = arith.addf %4, %7 : vector<1x8xf32>
    %c0_6 = arith.constant 0 : index
    %9 = memref.load %arg2[%c0_6] : memref<2xf32, #tpu.memory_space<smem>>
    %10 = vector.broadcast %9 : f32 to vector<1x8xf32>
    %11 = arith.addf %8, %10 : vector<1x8xf32>
    %c0_7 = arith.constant 0 : index
    %c0_8 = arith.constant 0 : index
    %12 = vector.load %arg4[%c0_7, %c0_8] : memref<2x8xf32, #tpu.memory_space<vmem>>, vector<1x8xf32>
    tpu.vector_store %arg4[%c0_7, %c0_8], %11 {strides = array<i32>} : memref<2x8xf32, #tpu.memory_space<vmem>>, vector<1x8xf32>,
    %c0_9 = arith.constant 0 : index
    %c1_10 = arith.constant 1 : index
    %13 = memref.load %arg1[%c0_9, %c1_10] : memref<2x2xf32, #tpu.memory_space<smem>>
    %14 = vector.broadcast %13 : f32 to vector<1x8xf32>
    %15 = arith.mulf %0, %14 : vector<1x8xf32>
    %c1_11 = arith.constant 1 : index
    %c1_12 = arith.constant 1 : index
    %16 = memref.load %arg1[%c1_11, %c1_12] : memref<2x2xf32, #tpu.memory_space<smem>>
    %17 = vector.broadcast %16 : f32 to vector<1x8xf32>
    %18 = arith.mulf %1, %17 : vector<1x8xf32>
    %19 = arith.addf %15, %18 : vector<1x8xf32>
    %c1_13 = arith.constant 1 : index
    %20 = memref.load %arg2[%c1_13] : memref<2xf32, #tpu.memory_space<smem>>
    %21 = vector.broadcast %20 : f32 to vector<1x8xf32>
    %22 = arith.addf %19, %21 : vector<1x8xf32>
    %c1_14 = arith.constant 1 : index
    %c0_15 = arith.constant 0 : index
    %23 = vector.load %arg4[%c1_14, %c0_15] : memref<2x8xf32, #tpu.memory_space<vmem>>, vector<1x8xf32>
    tpu.vector_store %arg4[%c1_14, %c0_15], %22 {strides = array<i32>} : memref<2x8xf32, #tpu.memory_space<vmem>>, vector<1x8xf32>,
    return
  }
  func.func @transform_0(%arg0: i32) -> (i32, i32) {
    %c0_i32 = arith.constant 0 : i32
    %c0_i32_0 = arith.constant 0 : i32
    %c0_i32_1 = arith.constant 0 : i32
    return %c0_i32, %c0_i32_0 : i32, i32
  }
  func.func @transform_1(%arg0: i32) -> i32 {
    %c0_i32 = arith.constant 0 : i32
    %c0_i32_0 = arith.constant 0 : i32
    return %c0_i32 : i32
  }
  func.func @transform_2(%arg0: i32) -> (i32, i32) {
    %c0_i32 = arith.constant 0 : i32
    %c0_i32_0 = arith.constant 0 : i32
    return %c0_i32, %arg0 : i32, i32
  }
  func.func @transform_3(%arg0: i32) -> (i32, i32) {
    %c0_i32 = arith.constant 0 : i32
    %c0_i32_0 = arith.constant 0 : i32
    return %c0_i32, %arg0 : i32, i32
  }
}

</mosaic_0001>

<bundles_post_ra>
// kernel: tpu_custom_call.1
= control target key start
LH: loop header
LB: loop body
LE: loop exit
PB: predicated region body
PF: predicated region fallthrough
CT: control target
= control target key end

     0   :  { %8 = vsyncpa [#allocation4], 0  ;;  %s192_s0 = inlined_call_operand.hbm [shape: f32[2,2], index: 0, kind: input, shape index: {}]   ;;  %s193_s1 = inlined_call_operand.vmem [shape: f32[2], index: 1, kind: input, shape index: {}]   ;;  %s194_s2 = inlined_call_operand.vmem [shape: f32[2,8], index: 2, kind: input, shape index: {}]   ;;  %s195_s3 = inlined_call_operand.hbm [shape: f32[2,8], index: 3, kind: output, shape index: {}]  }
   0x1   :  { %9 = vsyncpa [#allocation5], 0 }
   0x2   :  { %10 = vsyncpa [#allocation3], 0  ;;  %s25_s14 = sshll.u32 %s193_s1, 4  ;;  %s86_s17 = scalar_lea.hbm %s192_s0, 32  ;;  %s26_s14 = int_to_ptr.vmem [resolvable:$true] %s25_s14 }
   0x3   :  { %p87_p0 = scmp.ne.s32.totalorder %s192_s0, %s86_s17  ;;  %p90_p1 = scmp.lt.u32.totalorder %s86_s17, %s192_s0 }
   0x5   :  { %p92_p2 = pnand %p90_p1, %p87_p0 }
   0x7   :  { %95 = shalt.err (!%p92_p2)
}
   0x8   :  { %s136_s22 = smov [#allocation2]   ;;  %s96_s1 = scalar_lea.vmem %s26_s14, 16 }
   0x9   :  { %18 = dma.hbm_to_smem %s192_s0, 32, %s136_s22, [#allocation4]  }
   0xa   :  { %p97_p3 = scmp.ne.s32.totalorder %s26_s14, %s96_s1  ;;  %p101_p4 = scmp.lt.s32.totalorder %s26_s14, %s26_s14 }
   0xb   :  { %p102_p5 = scmp.lt.s32.totalorder %s96_s1, %s96_s1 }
   0xd   :  { %p103_p6 = por %p102_p5, %p101_p4 }
   0xf   :  { %p104_p7 = pnand %p103_p6, %p97_p3 }
  0x11   :  { %107 = shalt.err (!%p104_p7)
}
  0x12   :  { %s137_s25 = smov [#allocation6]  }
  0x13   :  { %28 = dma.vmem_to_smem %s26_s14, 16, %s137_s25, [#allocation5]  }
  0x14   :  { %130 = dma.done.wait [#allocation4], 32  }
  0x15   :  { %131 = vsyncadd [#allocation4], 4294967264 }
  0x16   :  { %132 = dma.done.wait [#allocation5], 16  }
  0x17   :  { %133 = vsyncadd [#allocation5], 4294967280 }
  0x18   :  { %37 = sfence }
  0x19   :  { %s40_s26 = sld [smem:[#allocation2]]  ;;  %s80_s29 = sld [smem:[#allocation2 + $0x1]]  ;;  %v38_v0 = vld [vmem:[%s194_s2] sm:$0x1]  ;;  %v39_v1 = vld [vmem:[%s194_s2 + $0x1] sm:$0x1] }
  0x1a   :  { %s79_s27 = sld [smem:[#allocation2 + $0x80]]  ;;  %s81_s0 = sld [smem:[#allocation2 + $0x81]]  ;;  %vm50_vm0 = vcmask 57344  }
  0x1b   :  { %s47_s28 = sld [smem:[#allocation6]]  ;;  %s82_s30 = sld [smem:[#allocation6 + $0x1]] }
  0x1c   :  { %s138_s8 = smov [#allocation7]  }
  0x1d   :  { %s69_s9 = sshll.u32 %s138_s8, 4  ;;  %s70_s9 = int_to_ptr.vmem [resolvable:$true] %s69_s9 }
  0x1e   :  { %s108_s2 = scalar_lea.vmem %s70_s9, 32  ;;  %p113_p9 = scmp.lt.s32.totalorder %s70_s9, %s70_s9 }
  0x1f   :  { %v41_v2 = vstv %s40_s26  ;;  %v53_v6 = vstv %s80_s29  ;;  %p109_p8 = scmp.ne.s32.totalorder %s70_s9, %s108_s2  ;;  %p114_p10 = scmp.lt.s32.totalorder %s108_s2, %s108_s2 }
  0x20   :  { %v42_v3 = vmul.f32 %v41_v2, %v38_v0  ;;  %v44_v4 = vstv %s79_s27  ;;  %v56_v7 = vstv %s81_s0  ;;  %v54_v9 = vmul.f32 %v53_v6, %v38_v0 }
  0x21   :  { %v45_v5 = vmul.f32 %v44_v4, %v39_v1  ;;  %v48_v8 = vstv %s47_s28  ;;  %v57_v10 = vmul.f32 %v56_v7, %v39_v1  ;;  %v60_v12 = vstv %s82_s30  ;;  %p115_p11 = por %p114_p10, %p113_p9 }
  0x23   :  { %v46_v11 = vadd.f32 %v45_v5, %v42_v3  ;;  %v58_v13 = vadd.f32 %v57_v10, %v54_v9  ;;  %p116_p12 = pnand %p115_p11, %p109_p8 }
  0x25   :  { %v49_v14 = vadd.f32 %v48_v8, %v46_v11  ;;  %v61_v15 = vadd.f32 %v60_v12, %v58_v13 }
  0x27   :  { %51 = vst.msk [vmem:[#allocation7] sm:$0x1] %vm50_vm0, %v49_v14  ;;  %62 = vst.msk [vmem:[#allocation7 + $0x1] sm:$0x1] %vm50_vm0, %v61_v15 }
  0x28   :  { %119 = shalt.err (!%p116_p12)
}
  0x29   :  { %s120_s12 = scalar_lea.hbm %s195_s3, 32 }
  0x2a   :  { %p121_p13 = scmp.ne.s32.totalorder %s195_s3, %s120_s12  ;;  %p124_p0 = scmp.lt.u32.totalorder %s120_s12, %s195_s3 }
  0x2c   :  { %p126_p1 = pnand %p124_p0, %p121_p13 }
  0x2e   :  { %129 = shalt.err (!%p126_p1)
}
  0x2f   :  { %72 = dma.vmem_to_hbm [thread:$0]  %s70_s9, 32, %s195_s3, [#allocation3]  }
  0x30   :  { %134 = dma.done.wait [#allocation3], 32  }
  0x31   :  { %135 = vsyncadd [#allocation3], 4294967264 }
  0x32   :  { %76 = vsyncpa [#allocation3], 1 }
  0x33   :  { %77 = vsyncpa [#allocation4], 1 }
  0x34   :  { %78 = vsyncpa [#allocation5], 1 }

</bundles_post_ra>
